<compile_context>
chip_gen: v6e
topology: v6e:2x2x1
jax: 0.10.0
libtpu: 0.0.40
codegen_flags: <defaults>
</compile_context>

<pallas_src>
import functools

import jax
import jax.numpy as jnp
from jax.experimental import pallas as pl
from jax.experimental.pallas import tpu as pltpu

BN_EPS = 1e-5


def _round_up(x: int, m: int) -> int:
    return ((x + m - 1) // m) * m


def _make_kernel(num_blocks: int, need_map: bool, n_real: int, n_pad: int):
    """Kernel body.

    refs:
      x_ref (n_pad, MAXD)      lane-dense activation slab
      w_ref (L, MAXD, MAXD)    stacked, pre-transposed, zero-padded weights
      v_ref (V8, MAXD)         stacked bias / gamma / beta rows
      o_ref (n_pad, MAXD)      lane-dense output slab
    """
    inv_n = 1.0 / float(n_real)

    def kernel(x_ref, w_ref, v_ref, o_ref):
        x = x_ref[...].astype(jnp.float32)          # (n_pad, MAXD)
        vecs = v_ref[...].astype(jnp.float32)       # (V8, MAXD)

        w_idx = 0
        v_idx = 0
        # ---- residual path -------------------------------------------------
        if need_map:
            residual = jnp.dot(x, w_ref[0].astype(jnp.float32),
                               preferred_element_type=jnp.float32) + vecs[0:1, :]
            w_idx, v_idx = 1, 1
        else:
            residual = x

        # Row mask only needed if the batch was padded on the sublane axis.
        if n_pad != n_real:
            row = jax.lax.broadcasted_iota(jnp.int32, (n_pad, 1), 0)
            mask = (row < n_real).astype(jnp.float32)
        else:
            mask = None

        # ---- main path: (Linear -> BatchNorm1d -> SiLU) * num_blocks -------
        h = x
        for b in range(num_blocks):
            w = w_ref[w_idx + b].astype(jnp.float32)      # (MAXD, MAXD)
            r = v_idx + 3 * b
            bia = vecs[r:r + 1, :]
            gam = vecs[r + 1:r + 2, :]
            bet = vecs[r + 2:r + 3, :]

            h = jnp.dot(h, w, preferred_element_type=jnp.float32) + bia

            # Single-pass batch statistics (biased variance, train-mode BN).
            h2 = h * h
            if mask is not None:
                s1 = jnp.sum(h * mask, axis=0, keepdims=True)
                s2 = jnp.sum(h2 * mask, axis=0, keepdims=True)
            else:
                s1 = jnp.sum(h, axis=0, keepdims=True)
                s2 = jnp.sum(h2, axis=0, keepdims=True)
            mean = s1 * inv_n
            var = jnp.maximum(s2 * inv_n - mean * mean, 0.0)

            # Normalize + affine (VPU) with rsqrt on the EUP, then SiLU (EUP).
            h = (h - mean) * jax.lax.rsqrt(var + BN_EPS) * gam + bet
            h = h * jax.nn.sigmoid(h)

        # ---- final Linear + residual add ------------------------------------
        w_last = w_ref[w_idx + num_blocks].astype(jnp.float32)
        b_last = vecs[v_idx + 3 * num_blocks:v_idx + 3 * num_blocks + 1, :]
        out = jnp.dot(h, w_last, preferred_element_type=jnp.float32) + b_last

        o_ref[...] = (residual + out).astype(o_ref.dtype)

    return kernel


def pack_params(params, *, in_dim, out_dim, hidden_dim, num_hl, dtype=jnp.float32):
    """One-time packing (hoisted out of the forward path): pre-transpose every
    linear weight to (fan_in, fan_out), zero-pad all feature dims to MAXD, and
    stack weights / vectors into two consolidated arrays."""
    need_map = in_dim != out_dim
    nb = num_hl + 1
    maxd = _round_up(max(in_dim, out_dim, hidden_dim), 128)

    def pad_w(w_t):                       # w_t: (fan_in, fan_out)
        fi, fo = w_t.shape
        return jnp.pad(w_t, ((0, maxd - fi), (0, maxd - fo)))

    def pad_v(v):                         # v: (features,)
        return jnp.pad(v, (0, maxd - v.shape[0]))

    ws, vs = [], []
    if need_map:
        ws.append(pad_w(jnp.asarray(params["map_w"], dtype).T))
        vs.append(pad_v(jnp.asarray(params["map_b"], dtype)))
    for i in range(nb):
        ws.append(pad_w(jnp.asarray(params["ws"][i], dtype).T))
        vs.append(pad_v(jnp.asarray(params["bs"][i], dtype)))
        vs.append(pad_v(jnp.asarray(params["gammas"][i], dtype)))
        vs.append(pad_v(jnp.asarray(params["betas"][i], dtype)))
    ws.append(pad_w(jnp.asarray(params["ws"][nb], dtype).T))
    vs.append(pad_v(jnp.asarray(params["bs"][nb], dtype)))

    # Pad the vector-stack row count to a multiple of 8 (clean sublane tiling,
    # no masked partial tiles in VMEM). Extra rows are zeros and never read.
    v_rows = len(vs)
    v_rows_pad = max(_round_up(v_rows, 8), 8)
    for _ in range(v_rows_pad - v_rows):
        vs.append(jnp.zeros((maxd,), dtype))

    w_stack = jnp.stack(ws)               # (L, MAXD, MAXD)
    v_stack = jnp.stack(vs)               # (V8, MAXD)
    meta = dict(need_map=need_map, num_blocks=nb, maxd=maxd, out_dim=out_dim)
    return w_stack, v_stack, meta


@functools.partial(jax.jit, static_argnames=("need_map", "num_blocks", "maxd", "out_dim"))
def _forward(x, w_stack, v_stack, *, need_map, num_blocks, maxd, out_dim):
    n, in_dim = x.shape
    n_pad = max(_round_up(n, 8), 8)

    # Only per-call layout work: place x into a lane-dense (n_pad, MAXD) slab.
    x_pad = jnp.zeros((n_pad, maxd), jnp.float32).at[:n, :in_dim].set(
        x.astype(jnp.float32))

    kernel = _make_kernel(num_blocks, need_map, n, n_pad)
    L = w_stack.shape[0]
    V = v_stack.shape[0]

    out_pad = pl.pallas_call(
        kernel,
        out_shape=jax.ShapeDtypeStruct((n_pad, maxd), x.dtype),
        grid=(1,),
        in_specs=[
            pl.BlockSpec((n_pad, maxd), lambda i: (0, 0)),
            pl.BlockSpec((L, maxd, maxd), lambda i: (0, 0, 0)),
            pl.BlockSpec((V, maxd), lambda i: (0, 0)),
        ],
        out_specs=pl.BlockSpec((n_pad, maxd), lambda i: (0, 0)),
        compiler_params=pltpu.CompilerParams(
            dimension_semantics=("arbitrary",),
            vmem_limit_bytes=32 * 1024 * 1024,   # safe default on v5e/v6e/v7x
        ),
    )(x_pad, w_stack, v_stack)

    return out_pad[:n, :out_dim]


def residual_block_forward(x, packed):
    w_stack, v_stack, meta = packed
    return _forward(x, w_stack, v_stack, **meta)


# ----------------------------- reference & init -----------------------------

def _reference_forward(x, params, *, in_dim, out_dim, num_hl):
    """Pure-JAX reference matching the PyTorch forward (BN in training mode)."""
    need_map = in_dim != out_dim
    residual = x @ params["map_w"].T + params["map_b"] if need_map else x
    h = x
    for i in range(num_hl + 1):
        h = h @ params["ws"][i].T + params["bs"][i]
        mean = jnp.mean(h, axis=0, keepdims=True)
        var = jnp.mean((h - mean) ** 2, axis=0, keepdims=True)
        h = (h - mean) / jnp.sqrt(var + BN_EPS) * params["gammas"][i] + params["betas"][i]
        h = h * jax.nn.sigmoid(h)
    h = h @ params["ws"][num_hl + 1].T + params["bs"][num_hl + 1]
    return residual + h


def init_params(key, in_dim, out_dim, hidden_dim, num_hl):
    ks = jax.random.split(key, 4 * (num_hl + 2) + 2)
    ki = iter(range(len(ks)))

    def lin(k_w, k_b, fan_in, fan_out):
        bound = 1.0 / jnp.sqrt(fan_in)
        w = jax.random.uniform(k_w, (fan_out, fan_in), jnp.float32, -bound, bound)
        b = jax.random.uniform(k_b, (fan_out,), jnp.float32, -bound, bound)
        return w, b

    ws, bs, gammas, betas = [], [], [], []
    w, b = lin(ks[next(ki)], ks[next(ki)], in_dim, hidden_dim)
    ws.append(w); bs.append(b)
    gammas.append(jnp.ones((hidden_dim,), jnp.float32))
    betas.append(jnp.zeros((hidden_dim,), jnp.float32))
    for _ in range(num_hl):
        w, b = lin(ks[next(ki)], ks[next(ki)], hidden_dim, hidden_dim)
        ws.append(w); bs.append(b)
        gammas.append(jnp.ones((hidden_dim,), jnp.float32))
        betas.append(jnp.zeros((hidden_dim,), jnp.float32))
    w, b = lin(ks[next(ki)], ks[next(ki)], hidden_dim, out_dim)
    ws.append(w); bs.append(b)
    map_w, map_b = lin(ks[next(ki)], ks[next(ki)], in_dim, out_dim)

    return {"ws": ws, "bs": bs, "gammas": gammas, "betas": betas,
            "map_w": map_w, "map_b": map_b}


if __name__ == "__main__":
    # Small shapes consistent with the module's forward: x is (batch, in_dim).
    batch, in_dim, out_dim, hidden_dim, num_hl = 8, 16, 24, 32, 2

    key = jax.random.PRNGKey(0)
    k_x, k_p = jax.random.split(key)
    x = jax.random.normal(k_x, (batch, in_dim), jnp.float32)
    params = init_params(k_p, in_dim, out_dim, hidden_dim, num_hl)

    # One-time packing (hoisted out of the per-call path).
    packed = pack_params(params, in_dim=in_dim, out_dim=out_dim,
                         hidden_dim=hidden_dim, num_hl=num_hl)

    out = residual_block_forward(x, packed)
    out = jax.block_until_ready(out)

    ref = _reference_forward(x, params, in_dim=in_dim, out_dim=out_dim, num_hl=num_hl)
    assert out.shape == (batch, out_dim)
    assert jnp.allclose(out, ref, atol=1e-4, rtol=1e-4), \
        f"max abs diff {jnp.max(jnp.abs(out - ref))}"

    # Also exercise the identity-residual path (in_dim == out_dim).
    in2 = out2 = 32
    params2 = init_params(jax.random.PRNGKey(1), in2, out2, hidden_dim, num_hl)
    x2 = jax.random.normal(jax.random.PRNGKey(2), (batch, in2), jnp.float32)
    packed2 = pack_params(params2, in_dim=in2, out_dim=out2,
                          hidden_dim=hidden_dim, num_hl=num_hl)
    out2_v = jax.block_until_ready(residual_block_forward(x2, packed2))
    ref2 = _reference_forward(x2, params2, in_dim=in2, out_dim=out2, num_hl=num_hl)
    assert jnp.allclose(out2_v, ref2, atol=1e-4, rtol=1e-4), \
        f"max abs diff {jnp.max(jnp.abs(out2_v - ref2))}"

    print("KERNEL_OK")
</pallas_src>

<mosaic_0001>
module attributes {stable_mosaic.version = 11 : i64} {
  func.func @kernel(%arg0: i32, %arg1: memref<8x128xf32, #tpu.memory_space<vmem>>, %arg2: memref<5x128x128xf32, #tpu.memory_space<vmem>>, %arg3: memref<16x128xf32, #tpu.memory_space<vmem>>, %arg4: memref<8x128xf32, #tpu.memory_space<vmem>>) attributes {dimension_semantics = [#tpu.dimension_semantics<arbitrary>], iteration_bounds = array<i64: 1>, scalar_prefetch = 0 : i64, scratch_operands = 0 : i64, tpu.core_type = #tpu.core_type<tc>, window_params = [{pipeline_mode = #tpu.pipeline_mode<synchronous>, transform_indices = @transform_0, window_bounds = array<i64: 8, 128>}, {pipeline_mode = #tpu.pipeline_mode<synchronous>, transform_indices = @transform_1, window_bounds = array<i64: 5, 128, 128>}, {pipeline_mode = #tpu.pipeline_mode<synchronous>, transform_indices = @transform_2, window_bounds = array<i64: 16, 128>}, {pipeline_mode = #tpu.pipeline_mode<synchronous>, transform_indices = @transform_3, window_bounds = array<i64: 8, 128>}]} {
    %c0 = arith.constant 0 : index
    %c0_0 = arith.constant 0 : index
    %0 = vector.load %arg1[%c0, %c0_0] : memref<8x128xf32, #tpu.memory_space<vmem>>, vector<8x128xf32>
    %c0_1 = arith.constant 0 : index
    %c0_2 = arith.constant 0 : index
    %1 = vector.load %arg3[%c0_1, %c0_2] : memref<16x128xf32, #tpu.memory_space<vmem>>, vector<16x128xf32>
    %c0_3 = arith.constant 0 : index
    %c0_4 = arith.constant 0 : index
    %c0_5 = arith.constant 0 : index
    %2 = vector.load %arg2[%c0_3, %c0_4, %c0_5] : memref<5x128x128xf32, #tpu.memory_space<vmem>>, vector<1x128x128xf32>
    %3 = vector.shape_cast %2 : vector<1x128x128xf32> to vector<128x128xf32>
    %cst = arith.constant dense<0.000000e+00> : vector<8x128xf32>
    %4 = tpu.matmul %0, %3, %cst {dimension_numbers = #tpu.dot_dimension_numbers<[1], [0], [0], [1], [0, 0, 1, 1], [], []>} : vector<8x128xf32>, vector<128x128xf32>, vector<8x128xf32> -> vector<8x128xf32>
    %5 = vector.extract_strided_slice %1 {offsets = [0, 0], sizes = [1, 128], strides = [1, 1]} : vector<16x128xf32> to vector<1x128xf32>
    %6 = vector.broadcast %5 : vector<1x128xf32> to vector<8x128xf32>
    %7 = arith.addf %4, %6 : vector<8x128xf32>
    %c1 = arith.constant 1 : index
    %c0_6 = arith.constant 0 : index
    %c0_7 = arith.constant 0 : index
    %8 = vector.load %arg2[%c1, %c0_6, %c0_7] : memref<5x128x128xf32, #tpu.memory_space<vmem>>, vector<1x128x128xf32>
    %9 = vector.shape_cast %8 : vector<1x128x128xf32> to vector<128x128xf32>
    %10 = vector.extract_strided_slice %1 {offsets = [1, 0], sizes = [1, 128], strides = [1, 1]} : vector<16x128xf32> to vector<1x128xf32>
    %11 = vector.extract_strided_slice %1 {offsets = [2, 0], sizes = [1, 128], strides = [1, 1]} : vector<16x128xf32> to vector<1x128xf32>
    %12 = vector.extract_strided_slice %1 {offsets = [3, 0], sizes = [1, 128], strides = [1, 1]} : vector<16x128xf32> to vector<1x128xf32>
    %cst_8 = arith.constant dense<0.000000e+00> : vector<8x128xf32>
    %13 = tpu.matmul %0, %9, %cst_8 {dimension_numbers = #tpu.dot_dimension_numbers<[1], [0], [0], [1], [0, 0, 1, 1], [], []>} : vector<8x128xf32>, vector<128x128xf32>, vector<8x128xf32> -> vector<8x128xf32>
    %14 = vector.broadcast %10 : vector<1x128xf32> to vector<8x128xf32>
    %15 = arith.addf %13, %14 : vector<8x128xf32>
    %16 = arith.mulf %15, %15 : vector<8x128xf32>
    %cst_9 = arith.constant dense<0.000000e+00> : vector<128xf32>
    %17 = vector.multi_reduction <add>, %15, %cst_9 [0] : vector<8x128xf32> to vector<128xf32>
    %18 = vector.shape_cast %17 : vector<128xf32> to vector<1x128xf32>
    %cst_10 = arith.constant dense<0.000000e+00> : vector<128xf32>
    %19 = vector.multi_reduction <add>, %16, %cst_10 [0] : vector<8x128xf32> to vector<128xf32>
    %20 = vector.shape_cast %19 : vector<128xf32> to vector<1x128xf32>
    %cst_11 = arith.constant 1.250000e-01 : f32
    %21 = vector.broadcast %cst_11 : f32 to vector<1x128xf32>
    %22 = arith.mulf %18, %21 : vector<1x128xf32>
    %cst_12 = arith.constant 1.250000e-01 : f32
    %23 = vector.broadcast %cst_12 : f32 to vector<1x128xf32>
    %24 = arith.mulf %20, %23 : vector<1x128xf32>
    %25 = arith.mulf %22, %22 : vector<1x128xf32>
    %26 = arith.subf %24, %25 : vector<1x128xf32>
    %cst_13 = arith.constant 0.000000e+00 : f32
    %27 = vector.broadcast %cst_13 : f32 to vector<1x128xf32>
    %28 = arith.maximumf %26, %27 : vector<1x128xf32>
    %29 = vector.broadcast %22 : vector<1x128xf32> to vector<8x128xf32>
    %30 = arith.subf %15, %29 : vector<8x128xf32>
    %cst_14 = arith.constant 9.99999974E-6 : f32
    %31 = vector.broadcast %cst_14 : f32 to vector<1x128xf32>
    %32 = arith.addf %28, %31 : vector<1x128xf32>
    %33 = math.rsqrt %32 : vector<1x128xf32>
    %34 = vector.broadcast %33 : vector<1x128xf32> to vector<8x128xf32>
    %35 = arith.mulf %30, %34 : vector<8x128xf32>
    %36 = vector.broadcast %11 : vector<1x128xf32> to vector<8x128xf32>
    %37 = arith.mulf %35, %36 : vector<8x128xf32>
    %38 = vector.broadcast %12 : vector<1x128xf32> to vector<8x128xf32>
    %39 = arith.addf %37, %38 : vector<8x128xf32>
    %40 = arith.negf %39 : vector<8x128xf32>
    %41 = math.exp %40 : vector<8x128xf32>
    %cst_15 = arith.constant 1.000000e+00 : f32
    %42 = vector.broadcast %cst_15 : f32 to vector<8x128xf32>
    %43 = arith.addf %42, %41 : vector<8x128xf32>
    %44 = arith.divf %42, %43 : vector<8x128xf32>
    %45 = arith.mulf %39, %44 : vector<8x128xf32>
    %c2 = arith.constant 2 : index
    %c0_16 = arith.constant 0 : index
    %c0_17 = arith.constant 0 : index
    %46 = vector.load %arg2[%c2, %c0_16, %c0_17] : memref<5x128x128xf32, #tpu.memory_space<vmem>>, vector<1x128x128xf32>
    %47 = vector.shape_cast %46 : vector<1x128x128xf32> to vector<128x128xf32>
    %48 = vector.extract_strided_slice %1 {offsets = [4, 0], sizes = [1, 128], strides = [1, 1]} : vector<16x128xf32> to vector<1x128xf32>
    %49 = vector.extract_strided_slice %1 {offsets = [5, 0], sizes = [1, 128], strides = [1, 1]} : vector<16x128xf32> to vector<1x128xf32>
    %50 = vector.extract_strided_slice %1 {offsets = [6, 0], sizes = [1, 128], strides = [1, 1]} : vector<16x128xf32> to vector<1x128xf32>
    %cst_18 = arith.constant dense<0.000000e+00> : vector<8x128xf32>
    %51 = tpu.matmul %45, %47, %cst_18 {dimension_numbers = #tpu.dot_dimension_numbers<[1], [0], [0], [1], [0, 0, 1, 1], [], []>} : vector<8x128xf32>, vector<128x128xf32>, vector<8x128xf32> -> vector<8x128xf32>
    %52 = vector.broadcast %48 : vector<1x128xf32> to vector<8x128xf32>
    %53 = arith.addf %51, %52 : vector<8x128xf32>
    %54 = arith.mulf %53, %53 : vector<8x128xf32>
    %cst_19 = arith.constant dense<0.000000e+00> : vector<128xf32>
    %55 = vector.multi_reduction <add>, %53, %cst_19 [0] : vector<8x128xf32> to vector<128xf32>
    %56 = vector.shape_cast %55 : vector<128xf32> to vector<1x128xf32>
    %cst_20 = arith.constant dense<0.000000e+00> : vector<128xf32>
    %57 = vector.multi_reduction <add>, %54, %cst_20 [0] : vector<8x128xf32> to vector<128xf32>
    %58 = vector.shape_cast %57 : vector<128xf32> to vector<1x128xf32>
    %cst_21 = arith.constant 1.250000e-01 : f32
    %59 = vector.broadcast %cst_21 : f32 to vector<1x128xf32>
    %60 = arith.mulf %56, %59 : vector<1x128xf32>
    %cst_22 = arith.constant 1.250000e-01 : f32
    %61 = vector.broadcast %cst_22 : f32 to vector<1x128xf32>
    %62 = arith.mulf %58, %61 : vector<1x128xf32>
    %63 = arith.mulf %60, %60 : vector<1x128xf32>
    %64 = arith.subf %62, %63 : vector<1x128xf32>
    %cst_23 = arith.constant 0.000000e+00 : f32
    %65 = vector.broadcast %cst_23 : f32 to vector<1x128xf32>
    %66 = arith.maximumf %64, %65 : vector<1x128xf32>
    %67 = vector.broadcast %60 : vector<1x128xf32> to vector<8x128xf32>
    %68 = arith.subf %53, %67 : vector<8x128xf32>
    %cst_24 = arith.constant 9.99999974E-6 : f32
    %69 = vector.broadcast %cst_24 : f32 to vector<1x128xf32>
    %70 = arith.addf %66, %69 : vector<1x128xf32>
    %71 = math.rsqrt %70 : vector<1x128xf32>
    %72 = vector.broadcast %71 : vector<1x128xf32> to vector<8x128xf32>
    %73 = arith.mulf %68, %72 : vector<8x128xf32>
    %74 = vector.broadcast %49 : vector<1x128xf32> to vector<8x128xf32>
    %75 = arith.mulf %73, %74 : vector<8x128xf32>
    %76 = vector.broadcast %50 : vector<1x128xf32> to vector<8x128xf32>
    %77 = arith.addf %75, %76 : vector<8x128xf32>
    %78 = arith.negf %77 : vector<8x128xf32>
    %79 = math.exp %78 : vector<8x128xf32>
    %cst_25 = arith.constant 1.000000e+00 : f32
    %80 = vector.broadcast %cst_25 : f32 to vector<8x128xf32>
    %81 = arith.addf %80, %79 : vector<8x128xf32>
    %82 = arith.divf %80, %81 : vector<8x128xf32>
    %83 = arith.mulf %77, %82 : vector<8x128xf32>
    %c3 = arith.constant 3 : index
    %c0_26 = arith.constant 0 : index
    %c0_27 = arith.constant 0 : index
    %84 = vector.load %arg2[%c3, %c0_26, %c0_27] : memref<5x128x128xf32, #tpu.memory_space<vmem>>, vector<1x128x128xf32>
    %85 = vector.shape_cast %84 : vector<1x128x128xf32> to vector<128x128xf32>
    %86 = vector.extract_strided_slice %1 {offsets = [7, 0], sizes = [1, 128], strides = [1, 1]} : vector<16x128xf32> to vector<1x128xf32>
    %87 = vector.extract_strided_slice %1 {offsets = [8, 0], sizes = [1, 128], strides = [1, 1]} : vector<16x128xf32> to vector<1x128xf32>
    %88 = vector.extract_strided_slice %1 {offsets = [9, 0], sizes = [1, 128], strides = [1, 1]} : vector<16x128xf32> to vector<1x128xf32>
    %cst_28 = arith.constant dense<0.000000e+00> : vector<8x128xf32>
    %89 = tpu.matmul %83, %85, %cst_28 {dimension_numbers = #tpu.dot_dimension_numbers<[1], [0], [0], [1], [0, 0, 1, 1], [], []>} : vector<8x128xf32>, vector<128x128xf32>, vector<8x128xf32> -> vector<8x128xf32>
    %90 = vector.broadcast %86 : vector<1x128xf32> to vector<8x128xf32>
    %91 = arith.addf %89, %90 : vector<8x128xf32>
    %92 = arith.mulf %91, %91 : vector<8x128xf32>
    %cst_29 = arith.constant dense<0.000000e+00> : vector<128xf32>
    %93 = vector.multi_reduction <add>, %91, %cst_29 [0] : vector<8x128xf32> to vector<128xf32>
    %94 = vector.shape_cast %93 : vector<128xf32> to vector<1x128xf32>
    %cst_30 = arith.constant dense<0.000000e+00> : vector<128xf32>
    %95 = vector.multi_reduction <add>, %92, %cst_30 [0] : vector<8x128xf32> to vector<128xf32>
    %96 = vector.shape_cast %95 : vector<128xf32> to vector<1x128xf32>
    %cst_31 = arith.constant 1.250000e-01 : f32
    %97 = vector.broadcast %cst_31 : f32 to vector<1x128xf32>
    %98 = arith.mulf %94, %97 : vector<1x128xf32>
    %cst_32 = arith.constant 1.250000e-01 : f32
    %99 = vector.broadcast %cst_32 : f32 to vector<1x128xf32>
    %100 = arith.mulf %96, %99 : vector<1x128xf32>
    %101 = arith.mulf %98, %98 : vector<1x128xf32>
    %102 = arith.subf %100, %101 : vector<1x128xf32>
    %cst_33 = arith.constant 0.000000e+00 : f32
    %103 = vector.broadcast %cst_33 : f32 to vector<1x128xf32>
    %104 = arith.maximumf %102, %103 : vector<1x128xf32>
    %105 = vector.broadcast %98 : vector<1x128xf32> to vector<8x128xf32>
    %106 = arith.subf %91, %105 : vector<8x128xf32>
    %cst_34 = arith.constant 9.99999974E-6 : f32
    %107 = vector.broadcast %cst_34 : f32 to vector<1x128xf32>
    %108 = arith.addf %104, %107 : vector<1x128xf32>
    %109 = math.rsqrt %108 : vector<1x128xf32>
    %110 = vector.broadcast %109 : vector<1x128xf32> to vector<8x128xf32>
    %111 = arith.mulf %106, %110 : vector<8x128xf32>
    %112 = vector.broadcast %87 : vector<1x128xf32> to vector<8x128xf32>
    %113 = arith.mulf %111, %112 : vector<8x128xf32>
    %114 = vector.broadcast %88 : vector<1x128xf32> to vector<8x128xf32>
    %115 = arith.addf %113, %114 : vector<8x128xf32>
    %116 = arith.negf %115 : vector<8x128xf32>
    %117 = math.exp %116 : vector<8x128xf32>
    %cst_35 = arith.constant 1.000000e+00 : f32
    %118 = vector.broadcast %cst_35 : f32 to vector<8x128xf32>
    %119 = arith.addf %118, %117 : vector<8x128xf32>
    %120 = arith.divf %118, %119 : vector<8x128xf32>
    %121 = arith.mulf %115, %120 : vector<8x128xf32>
    %c4 = arith.constant 4 : index
    %c0_36 = arith.constant 0 : index
    %c0_37 = arith.constant 0 : index
    %122 = vector.load %arg2[%c4, %c0_36, %c0_37] : memref<5x128x128xf32, #tpu.memory_space<vmem>>, vector<1x128x128xf32>
    %123 = vector.shape_cast %122 : vector<1x128x128xf32> to vector<128x128xf32>
    %124 = vector.extract_strided_slice %1 {offsets = [10, 0], sizes = [1, 128], strides = [1, 1]} : vector<16x128xf32> to vector<1x128xf32>
    %cst_38 = arith.constant dense<0.000000e+00> : vector<8x128xf32>
    %125 = tpu.matmul %121, %123, %cst_38 {dimension_numbers = #tpu.dot_dimension_numbers<[1], [0], [0], [1], [0, 0, 1, 1], [], []>} : vector<8x128xf32>, vector<128x128xf32>, vector<8x128xf32> -> vector<8x128xf32>
    %126 = vector.broadcast %124 : vector<1x128xf32> to vector<8x128xf32>
    %127 = arith.addf %125, %126 : vector<8x128xf32>
    %128 = arith.addf %7, %127 : vector<8x128xf32>
    %c0_39 = arith.constant 0 : index
    %c0_40 = arith.constant 0 : index
    %129 = vector.load %arg4[%c0_39, %c0_40] : memref<8x128xf32, #tpu.memory_space<vmem>>, vector<8x128xf32>
    tpu.vector_store %arg4[%c0_39, %c0_40], %128 {strides = array<i32>} : memref<8x128xf32, #tpu.memory_space<vmem>>, vector<8x128xf32>,
    return
  }
  func.func @transform_0(%arg0: i32) -> (i32, i32) {
    %c0_i32 = arith.constant 0 : i32
    %c0_i32_0 = arith.constant 0 : i32
    %c0_i32_1 = arith.constant 0 : i32
    return %c0_i32, %c0_i32_0 : i32, i32
  }
  func.func @transform_1(%arg0: i32) -> (i32, i32, i32) {
    %c0_i32 = arith.constant 0 : i32
    %c0_i32_0 = arith.constant 0 : i32
    %c0_i32_1 = arith.constant 0 : i32
    %c0_i32_2 = arith.constant 0 : i32
    return %c0_i32, %c0_i32_0, %c0_i32_1 : i32, i32, i32
  }
  func.func @transform_2(%arg0: i32) -> (i32, i32) {
    %c0_i32 = arith.constant 0 : i32
    %c0_i32_0 = arith.constant 0 : i32
    %c0_i32_1 = arith.constant 0 : i32
    return %c0_i32, %c0_i32_0 : i32, i32
  }
  func.func @transform_3(%arg0: i32) -> (i32, i32) {
    %c0_i32 = arith.constant 0 : i32
    %c0_i32_0 = arith.constant 0 : i32
    %c0_i32_1 = arith.constant 0 : i32
    return %c0_i32, %c0_i32_0 : i32, i32
  }
}

</mosaic_0001>

<bundles_post_ra>
// kernel: _forward.1
= control target key start
LH: loop header
LB: loop body
LE: loop exit
PB: predicated region body
PF: predicated region fallthrough
CT: control target
= control target key end

     0   :  { %8 = vsyncpa [#allocation3], 0  ;;  %s1117_s0 = inlined_call_operand.vmem [shape: f32[8,128], index: 0, kind: input, shape index: {}]   ;;  %s1118_s1 = inlined_call_operand.hbm [shape: f32[5,128,128], index: 1, kind: input, shape index: {}]   ;;  %s1119_s2 = inlined_call_operand.vmem [shape: f32[16,128], index: 2, kind: input, shape index: {}]   ;;  %s1120_s3 = inlined_call_operand.hbm [shape: f32[8,128], index: 3, kind: output, shape index: {}]  }
   0x1   :  { %9 = vsyncpa [#allocation4], 0  ;;  %s951_s12 = smov [#allocation2]  }
   0x2   :  { %s17_s13 = sshll.u32 %s951_s12, 4  ;;  %s18_s13 = int_to_ptr.vmem [resolvable:$true] %s17_s13 }
   0x3   :  { %s915_s14 = scalar_lea.vmem %s18_s13, 10240  ;;  %p920_p1 = scmp.lt.s32.totalorder %s18_s13, %s18_s13 }
   0x4   :  { %p916_p0 = scmp.ne.s32.totalorder %s18_s13, %s915_s14  ;;  %p921_p2 = scmp.lt.s32.totalorder %s915_s14, %s915_s14 }
   0x6   :  { %p922_p3 = por %p921_p2, %p920_p1 }
   0x8   :  { %p923_p4 = pnand %p922_p3, %p916_p0 }
   0xa   :  { %926 = shalt.err (!%p923_p4)
}
   0xb   :  { %s952_s15 = smov 128   ;;  %s953_s16 = smov 8  }
   0xc   :  { %23 = dma.hbm_to_vmem [thread:$0]  %s1118_s1, 10240, %s18_s13, [#allocation3], %s952_s15, %s952_s15, %s953_s16  }
   0xd   :  { %947 = dma.done.wait [#allocation3], 10240  }
   0xe   :  { %948 = vsyncadd [#allocation3], 4294957056  ;;  %v954_v0 = vmov 0.0   ;;  %vm955_vm0 = vmmov 0   ;;  %v138_v1 = vld [vmem:[#allocation2 + $0xf8] sm:$0xff]  ;;  %v137_v2 = vld [vmem:[#allocation2 + $0xf0] sm:$0xff]  ;;  %v48_v50 = vlaneseq }
   0xf   :  { %743 = vmatprep.subr.mxu1 %v954_v0  ;;  %775 = vmatprep.mubr.msk.f32.mxu1 %vm955_vm0, %v954_v0  ;;  %v136_v3 = vld [vmem:[#allocation2 + $0xe8] sm:$0xff]  ;;  %v135_v4 = vld [vmem:[#allocation2 + $0xe0] sm:$0xff]  ;;  %v134_v5 = vld [vmem:[#allocation2 + $0xd8] sm:$0xff] }
  0x10   :  { %708 = vmatprep.subr.mxu0 %v954_v0  ;;  %740 = vmatprep.mubr.msk.f32.mxu0 %vm955_vm0, %v954_v0  ;;  %v133_v6 = vld [vmem:[#allocation2 + $0xd0] sm:$0xff]  ;;  %v132_v7 = vld [vmem:[#allocation2 + $0xc8] sm:$0xff]  ;;  %v131_v8 = vld [vmem:[#allocation2 + $0xc0] sm:$0xff]  ;;  %v1041_v51 = vshrl.u32 %v48_v50, 7 }
  0x11   :  { %744 = vmatpush3.msra.mxu1 %v138_v1  ;;  %v130_v9 = vld [vmem:[#allocation2 + $0xb8] sm:$0xff]  ;;  %v129_v10 = vld [vmem:[#allocation2 + $0xb0] sm:$0xff]  ;;  %v128_v11 = vld [vmem:[#allocation2 + $0xa8] sm:$0xff] }
  0x12   :  { %745 = vmatprep.subr.mxu1 %v954_v0  ;;  %v127_v12 = vld [vmem:[#allocation2 + $0xa0] sm:$0xff]  ;;  %v126_v13 = vld [vmem:[#allocation2 + $0x98] sm:$0xff]  ;;  %v125_v14 = vld [vmem:[#allocation2 + $0x90] sm:$0xff]  ;;  %v141_v52 = vsub.s32 1, %v1041_v51 }
  0x13   :  { %746 = vmatpush3.msra.mxu1 %v137_v2  ;;  %v124_v15 = vld [vmem:[#allocation2 + $0x88] sm:$0xff]  ;;  %v123_v16 = vld [vmem:[#allocation2 + $0x80] sm:$0xff]  ;;  %v47_v18 = vld [vmem:[#allocation2 + $0x78] sm:$0xff] }
  0x14   :  { %747 = vmatprep.subr.mxu1 %v954_v0  ;;  %v29_v17 = vld [vmem:[%s1117_s0] sm:$0xff]  ;;  %709 = vmatpush3.msra.mxu0 %v47_v18  ;;  %v46_v19 = vld [vmem:[#allocation2 + $0x70] sm:$0xff]  ;;  %v45_v20 = vld [vmem:[#allocation2 + $0x68] sm:$0xff] }
  0x15   :  { %748 = vmatpush3.msra.mxu1 %v136_v3  ;;  %710 = vmatprep.subr.mxu0 %v954_v0  ;;  %v44_v21 = vld [vmem:[#allocation2 + $0x60] sm:$0xff]  ;;  %v43_v22 = vld [vmem:[#allocation2 + $0x58] sm:$0xff]  ;;  %v42_v23 = vld [vmem:[#allocation2 + $0x50] sm:$0xff] }
  0x16   :  { %749 = vmatprep.subr.mxu1 %v954_v0  ;;  %711 = vmatpush3.msra.mxu0 %v46_v19  ;;  %v41_v24 = vld [vmem:[#allocation2 + $0x48] sm:$0xff]  ;;  %v40_v25 = vld [vmem:[#allocation2 + $0x40] sm:$0xff]  ;;  %v39_v26 = vld [vmem:[#allocation2 + $0x38] sm:$0xff] }
  0x17   :  { %750 = vmatpush3.msra.mxu1 %v135_v4  ;;  %712 = vmatprep.subr.mxu0 %v954_v0  ;;  %v38_v27 = vld [vmem:[#allocation2 + $0x30] sm:$0xff]  ;;  %v37_v28 = vld [vmem:[#allocation2 + $0x28] sm:$0xff]  ;;  %v36_v29 = vld [vmem:[#allocation2 + $0x20] sm:$0xff] }
  0x18   :  { %751 = vmatprep.subr.mxu1 %v954_v0  ;;  %713 = vmatpush3.msra.mxu0 %v45_v20  ;;  %v35_v30 = vld [vmem:[#allocation2 + $0x18] sm:$0xff]  ;;  %v34_v31 = vld [vmem:[#allocation2 + $0x10] sm:$0xff]  ;;  %v33_v32 = vld [vmem:[#allocation2 + $0x8] sm:$0xff] }
  0x19   :  { %752 = vmatpush3.msra.mxu1 %v134_v5  ;;  %714 = vmatprep.subr.mxu0 %v954_v0  ;;  %v32_v33 = vld [vmem:[#allocation2] sm:$0xff]  ;;  %v268_v34 = vld [vmem:[#allocation2 + $0x178] sm:$0xff]  ;;  %v267_v35 = vld [vmem:[#allocation2 + $0x170] sm:$0xff] }
  0x1a   :  { %753 = vmatprep.subr.mxu1 %v954_v0  ;;  %715 = vmatpush3.msra.mxu0 %v44_v21  ;;  %v266_v36 = vld [vmem:[#allocation2 + $0x168] sm:$0xff]  ;;  %v265_v37 = vld [vmem:[#allocation2 + $0x160] sm:$0xff]  ;;  %v264_v38 = vld [vmem:[#allocation2 + $0x158] sm:$0xff] }
  0x1b   :  { %754 = vmatpush3.msra.mxu1 %v133_v6  ;;  %716 = vmatprep.subr.mxu0 %v954_v0  ;;  %v263_v39 = vld [vmem:[#allocation2 + $0x150] sm:$0xff]  ;;  %v262_v40 = vld [vmem:[#allocation2 + $0x148] sm:$0xff]  ;;  %v261_v41 = vld [vmem:[#allocation2 + $0x140] sm:$0xff] }
  0x1c   :  { %755 = vmatprep.subr.mxu1 %v954_v0  ;;  %717 = vmatpush3.msra.mxu0 %v43_v22  ;;  %v260_v42 = vld [vmem:[#allocation2 + $0x138] sm:$0xff]  ;;  %v259_v43 = vld [vmem:[#allocation2 + $0x130] sm:$0xff]  ;;  %v258_v44 = vld [vmem:[#allocation2 + $0x128] sm:$0xff] }
  0x1d   :  { %756 = vmatpush3.msra.mxu1 %v132_v7  ;;  %718 = vmatprep.subr.mxu0 %v954_v0  ;;  %v257_v45 = vld [vmem:[#allocation2 + $0x120] sm:$0xff]  ;;  %v256_v46 = vld [vmem:[#allocation2 + $0x118] sm:$0xff]  ;;  %v255_v47 = vld [vmem:[#allocation2 + $0x110] sm:$0xff] }
  0x1e   :  { %757 = vmatprep.subr.mxu1 %v954_v0  ;;  %719 = vmatpush3.msra.mxu0 %v42_v23  ;;  %v254_v48 = vld [vmem:[#allocation2 + $0x108] sm:$0xff]  ;;  %v253_v49 = vld [vmem:[#allocation2 + $0x100] sm:$0xff] }
  0x1f   :  { %758 = vmatpush3.msra.mxu1 %v131_v8  ;;  %720 = vmatprep.subr.mxu0 %v954_v0  ;;  %v1047_v53 = vld [vmem:[%s1119_s2] sm:$0xff] }
  0x20   :  { %759 = vmatprep.subr.mxu1 %v954_v0  ;;  %721 = vmatpush3.msra.mxu0 %v41_v24  ;;  %v142_v54 = vrot.slane %v1047_v53, %v141_v52 }
  0x21   :  { %760 = vmatpush3.msra.mxu1 %v130_v9  ;;  %722 = vmatprep.subr.mxu0 %v954_v0 }
  0x22   :  { %761 = vmatprep.subr.mxu1 %v954_v0  ;;  %723 = vmatpush3.msra.mxu0 %v40_v25 }
  0x23   :  { %762 = vmatpush3.msra.mxu1 %v129_v10  ;;  %724 = vmatprep.subr.mxu0 %v954_v0 }
  0x24   :  { %763 = vmatprep.subr.mxu1 %v954_v0  ;;  %725 = vmatpush3.msra.mxu0 %v39_v26 }
  0x25   :  { %764 = vmatpush3.msra.mxu1 %v128_v11  ;;  %726 = vmatprep.subr.mxu0 %v954_v0 }
  0x26   :  { %765 = vmatprep.subr.mxu1 %v954_v0  ;;  %727 = vmatpush3.msra.mxu0 %v38_v27 }
  0x27   :  { %766 = vmatpush3.msra.mxu1 %v127_v12  ;;  %728 = vmatprep.subr.mxu0 %v954_v0 }
  0x28   :  { %767 = vmatprep.subr.mxu1 %v954_v0  ;;  %729 = vmatpush3.msra.mxu0 %v37_v28  ;;  %v50_v28 = vsub.s32 0, %v1041_v51 }
  0x29   :  { %768 = vmatpush3.msra.mxu1 %v126_v13  ;;  %730 = vmatprep.subr.mxu0 %v954_v0 }
  0x2a   :  { %769 = vmatprep.subr.mxu1 %v954_v0  ;;  %731 = vmatpush3.msra.mxu0 %v36_v29  ;;  %v51_v29 = vrot.slane %v1047_v53, %v50_v28 }
  0x2b   :  { %770 = vmatpush3.msra.mxu1 %v125_v14  ;;  %732 = vmatprep.subr.mxu0 %v954_v0  ;;  %v237_v14 = vsub.s32 2, %v1041_v51 }
  0x2c   :  { %771 = vmatprep.subr.mxu1 %v954_v0  ;;  %733 = vmatpush3.msra.mxu0 %v35_v30 }
  0x2d   :  { %772 = vmatpush3.msra.mxu1 %v124_v15  ;;  %734 = vmatprep.subr.mxu0 %v954_v0  ;;  %v242_v15 = vsub.s32 3, %v1041_v51 }
  0x2e   :  { %773 = vmatprep.subr.mxu1 %v954_v0  ;;  %735 = vmatpush3.msra.mxu0 %v34_v31 }
  0x2f   :  { %774 = vmatpush3.msra.mxu1 %v123_v16  ;;  %736 = vmatprep.subr.mxu0 %v954_v0  ;;  %v243_v20 = vrot.slane %v1047_v53, %v242_v15  ;;  %v372_v15 = vsub.s32 6, %v1041_v51 }
  0x30   :  { %776 = vmatmul.mubr.f32.vlgmr.msra.gmra.mxu1 %v29_v17  ;;  %813 = vmatprep.subr.mxu1 %v954_v0 }
  0x31   :  { %845 = vmatprep.mubr.msk.f32.mxu1 %vm955_vm0, %v954_v0  ;;  %737 = vmatpush3.msra.mxu0 %v33_v32 }
  0x32   :  { %738 = vmatprep.subr.mxu0 %v954_v0 }
  0x33   :  { %739 = vmatpush3.msra.mxu0 %v32_v33  ;;  %v398_v33 = vld [vmem:[#allocation2 + $0x1f8] sm:$0xff] }
  0x34   :  { %741 = vmatmul.mubr.f32.vlgmr.msra.gmra.mxu0 %v29_v17  ;;  %778 = vmatprep.subr.mxu0 %v954_v0  ;;  %v238_v17 = vrot.slane %v1047_v53, %v237_v14 }
  0x35   :  { %779 = vmatpush3.msra.mxu0 %v268_v34  ;;  %810 = vmatprep.mubr.msk.f32.mxu0 %vm955_vm0, %v954_v0  ;;  %v397_v34 = vld [vmem:[#allocation2 + $0x1f0] sm:$0xff] }
  0x36   :  { %780 = vmatprep.subr.mxu0 %v954_v0  ;;  %814 = vmatpush3.msra.mxu1 %v398_v33  ;;  %v525_v33 = vld [vmem:[#allocation2 + $0x260] sm:$0xff] }
  0x37   :  { %781 = vmatpush3.msra.mxu0 %v267_v35  ;;  %815 = vmatprep.subr.mxu1 %v954_v0  ;;  %v396_v35 = vld [vmem:[#allocation2 + $0x1e8] sm:$0xff] }
  0x38   :  { %782 = vmatprep.subr.mxu0 %v954_v0  ;;  %816 = vmatpush3.msra.mxu1 %v397_v34  ;;  %v524_v34 = vld [vmem:[#allocation2 + $0x258] sm:$0xff] }
  0x39   :  { %783 = vmatpush3.msra.mxu0 %v266_v36  ;;  %817 = vmatprep.subr.mxu1 %v954_v0  ;;  %v395_v36 = vld [vmem:[#allocation2 + $0x1e0] sm:$0xff] }
  0x3a   :  { %784 = vmatprep.subr.mxu0 %v954_v0  ;;  %818 = vmatpush3.msra.mxu1 %v396_v35  ;;  %v523_v35 = vld [vmem:[#allocation2 + $0x250] sm:$0xff] }
  0x3b   :  { %785 = vmatpush3.msra.mxu0 %v265_v37  ;;  %819 = vmatprep.subr.mxu1 %v954_v0  ;;  %v394_v37 = vld [vmem:[#allocation2 + $0x1d8] sm:$0xff] }
  0x3c   :  { %786 = vmatprep.subr.mxu0 %v954_v0  ;;  %820 = vmatpush3.msra.mxu1 %v395_v36  ;;  %v522_v36 = vld [vmem:[#allocation2 + $0x248] sm:$0xff] }
  0x3d   :  { %787 = vmatpush3.msra.mxu0 %v264_v38  ;;  %821 = vmatprep.subr.mxu1 %v954_v0  ;;  %v393_v38 = vld [vmem:[#allocation2 + $0x1d0] sm:$0xff] }
  0x3e   :  { %788 = vmatprep.subr.mxu0 %v954_v0  ;;  %822 = vmatpush3.msra.mxu1 %v394_v37  ;;  %v521_v37 = vld [vmem:[#allocation2 + $0x240] sm:$0xff] }
  0x3f   :  { %789 = vmatpush3.msra.mxu0 %v263_v39  ;;  %823 = vmatprep.subr.mxu1 %v954_v0  ;;  %v392_v39 = vld [vmem:[#allocation2 + $0x1c8] sm:$0xff] }
  0x40   :  { %790 = vmatprep.subr.mxu0 %v954_v0  ;;  %824 = vmatpush3.msra.mxu1 %v393_v38  ;;  %v520_v38 = vld [vmem:[#allocation2 + $0x238] sm:$0xff] }
  0x41   :  { %791 = vmatpush3.msra.mxu0 %v262_v40  ;;  %825 = vmatprep.subr.mxu1 %v954_v0  ;;  %v391_v40 = vld [vmem:[#allocation2 + $0x1c0] sm:$0xff] }
  0x42   :  { %792 = vmatprep.subr.mxu0 %v954_v0  ;;  %826 = vmatpush3.msra.mxu1 %v392_v39  ;;  %v519_v39 = vld [vmem:[#allocation2 + $0x230] sm:$0xff] }
  0x43   :  { %793 = vmatpush3.msra.mxu0 %v261_v41  ;;  %827 = vmatprep.subr.mxu1 %v954_v0  ;;  %v390_v41 = vld [vmem:[#allocation2 + $0x1b8] sm:$0xff] }
  0x44   :  { %794 = vmatprep.subr.mxu0 %v954_v0  ;;  %828 = vmatpush3.msra.mxu1 %v391_v40  ;;  %v518_v40 = vld [vmem:[#allocation2 + $0x228] sm:$0xff] }
  0x45   :  { %795 = vmatpush3.msra.mxu0 %v260_v42  ;;  %829 = vmatprep.subr.mxu1 %v954_v0  ;;  %v389_v42 = vld [vmem:[#allocation2 + $0x1b0] sm:$0xff] }
  0x46   :  { %796 = vmatprep.subr.mxu0 %v954_v0  ;;  %830 = vmatpush3.msra.mxu1 %v390_v41  ;;  %v517_v41 = vld [vmem:[#allocation2 + $0x220] sm:$0xff] }
  0x47   :  { %797 = vmatpush3.msra.mxu0 %v259_v43  ;;  %831 = vmatprep.subr.mxu1 %v954_v0  ;;  %v388_v43 = vld [vmem:[#allocation2 + $0x1a8] sm:$0xff] }
  0x48   :  { %798 = vmatprep.subr.mxu0 %v954_v0  ;;  %832 = vmatpush3.msra.mxu1 %v389_v42  ;;  %v516_v42 = vld [vmem:[#allocation2 + $0x218] sm:$0xff] }
  0x49   :  { %799 = vmatpush3.msra.mxu0 %v258_v44  ;;  %833 = vmatprep.subr.mxu1 %v954_v0  ;;  %v387_v44 = vld [vmem:[#allocation2 + $0x1a0] sm:$0xff] }
  0x4a   :  { %800 = vmatprep.subr.mxu0 %v954_v0  ;;  %834 = vmatpush3.msra.mxu1 %v388_v43  ;;  %v515_v43 = vld [vmem:[#allocation2 + $0x210] sm:$0xff] }
  0x4b   :  { %801 = vmatpush3.msra.mxu0 %v257_v45  ;;  %835 = vmatprep.subr.mxu1 %v954_v0  ;;  %v386_v45 = vld [vmem:[#allocation2 + $0x198] sm:$0xff] }
  0x4c   :  { %802 = vmatprep.subr.mxu0 %v954_v0  ;;  %836 = vmatpush3.msra.mxu1 %v387_v44  ;;  %v514_v44 = vld [vmem:[#allocation2 + $0x208] sm:$0xff] }
  0x4d   :  { %803 = vmatpush3.msra.mxu0 %v256_v46  ;;  %837 = vmatprep.subr.mxu1 %v954_v0  ;;  %v385_v46 = vld [vmem:[#allocation2 + $0x190] sm:$0xff] }
  0x4e   :  { %804 = vmatprep.subr.mxu0 %v954_v0  ;;  %838 = vmatpush3.msra.mxu1 %v386_v45  ;;  %v513_v45 = vld [vmem:[#allocation2 + $0x200] sm:$0xff] }
  0x4f   :  { %805 = vmatpush3.msra.mxu0 %v255_v47  ;;  %839 = vmatprep.subr.mxu1 %v954_v0  ;;  %v384_v47 = vld [vmem:[#allocation2 + $0x188] sm:$0xff] }
  0x50   :  { %806 = vmatprep.subr.mxu0 %v954_v0  ;;  %840 = vmatpush3.msra.mxu1 %v385_v46  ;;  %v401_v46 = vsub.s32 7, %v1041_v51 }
  0x51   :  { %807 = vmatpush3.msra.mxu0 %v254_v48  ;;  %841 = vmatprep.subr.mxu1 %v954_v0  ;;  %v383_v48 = vld [vmem:[#allocation2 + $0x180] sm:$0xff] }
  0x52   :  { %808 = vmatprep.subr.mxu0 %v954_v0  ;;  %842 = vmatpush3.msra.mxu1 %v384_v47  ;;  %v402_v47 = vrot.slane %v1047_v53, %v401_v46 }
  0x53   :  { %809 = vmatpush3.msra.mxu0 %v253_v49  ;;  %843 = vmatprep.subr.mxu1 %v954_v0  ;;  %v271_v49 = vsub.s32 4, %v1041_v51 }
  0x54   :  { %848 = vmatprep.subr.mxu0 %v954_v0  ;;  %844 = vmatpush3.msra.mxu1 %v383_v48 }
  0x55   :  { %v272_v50 = vrot.slane %v1047_v53, %v271_v49 }
  0xf0   :  { %v209_v55 = vpop.f32.mrf.mxu1 }
  0xf1   :  { %v210_v56 = vadd.f32 %v209_v55, %v142_v54 }
  0xf2   :  { %v777_v57 = vpop.f32.mrf.mxu1 }
  0xf3   :  { %v213_v58 = vmul.f32 %v210_v56, %v210_v56  ;;  %v214_v59 = vrot.slane %v210_v56, 4 }
  0xf4   :  { %v118_v30 = vpop.f32.mrf.mxu0 }
  0xf5   :  { %v215_v60 = vadd.f32 %v214_v59, %v210_v56  ;;  %v220_v61 = vrot.slane %v213_v58, 4  ;;  %v1064_v31 = vadd.f32 %v118_v30, %v51_v29  ;;  %v528_v29 = vld [vmem:[#allocation2 + $0x278] sm:$0xff]  ;;  %v527_v30 = vld [vmem:[#allocation2 + $0x270] sm:$0xff] }
  0xf6   :  { %v742_v32 = vpop.f32.mrf.mxu0 }
  0xf7   :  { %v216_v62 = vrot.slane %v215_v60, 2  ;;  %v221_v63 = vadd.f32 %v220_v61, %v213_v58  ;;  %v526_v32 = vld [vmem:[#allocation2 + $0x268] sm:$0xff] }
  0xf9   :  { %v217_v1 = vadd.f32 %v216_v62, %v215_v60  ;;  %v222_v2 = vrot.slane %v221_v63, 2 }
  0xfb   :  { %v218_v3 = vrot.slane %v217_v1, 1  ;;  %v223_v4 = vadd.f32 %v222_v2, %v221_v63 }
  0xfd   :  { %v219_v5 = vadd.f32 %v218_v3, %v217_v1  ;;  %v224_v6 = vrot.slane %v223_v4, 1 }
  0xff   :  { %v225_v7 = vadd.f32 %v224_v6, %v223_v4  ;;  %v226_v8 = vmul.f32 0.125, %v219_v5 }
 0x101   :  { %v227_v9 = vmul.f32 0.125, %v225_v7  ;;  %v228_v10 = vmul.f32 %v226_v8, %v226_v8  ;;  %v231_v16 = vsub.f32 %v210_v56, %v226_v8 }
 0x103   :  { %v229_v11 = vsub.f32 %v227_v9, %v228_v10 }
 0x105   :  { %v230_v12 = vmax.f32 %v229_v11, 0.0 }
 0x107   :  { %v232_v13 = vadd.f32 1e-05, %v230_v12 }
 0x109   :  { %889 = vrsqrt.f32 %v232_v13  ;;  %v367_v13 = vsub.s32 5, %v1041_v51 }
 0x116   :  { %v890_v18 = vpop.eup %889 }
 0x117   :  { %v234_v19 = vmul.f32 %v890_v18, %v231_v16 }
 0x119   :  { %v239_v21 = vmul.f32 %v238_v17, %v234_v19  ;;  %v368_v17 = vrot.slane %v1047_v53, %v367_v13 }
 0x11b   :  { %v244_v22 = vadd.f32 %v243_v20, %v239_v21  ;;  %v373_v20 = vrot.slane %v1047_v53, %v372_v15 }
 0x11d   :  { %v620_v23 = vmul.f32 -1.442695, %v244_v22 }
 0x11f   :  { %891 = vpow2.f32 %v620_v23 }
 0x12c   :  { %v892_v24 = vpop.eup %891 }
 0x12d   :  { %v248_v25 = vadd.f32 1.0, %v892_v24 }
 0x12f   :  { %893 = vrcp.f32 %v248_v25 }
 0x13c   :  { %v894_v26 = vpop.eup %893 }
 0x13d   :  { %v251_v27 = vmul.f32 %v894_v26, %v244_v22 }
 0x13f   :  { %811 = vmatmul.mubr.f32.vlgmr.msra.gmra.mxu0 %v251_v27 }
 0x140   :  { %880 = vmatprep.mubr.msk.f32.mxu0 %vm955_vm0, %v954_v0  ;;  %849 = vmatpush3.msra.mxu0 %v528_v29 }
 0x141   :  { %850 = vmatprep.subr.mxu0 %v954_v0 }
 0x142   :  { %851 = vmatpush3.msra.mxu0 %v527_v30 }
 0x143   :  { %852 = vmatprep.subr.mxu0 %v954_v0 }
 0x144   :  { %853 = vmatpush3.msra.mxu0 %v526_v32 }
 0x145   :  { %854 = vmatprep.subr.mxu0 %v954_v0 }
 0x146   :  { %855 = vmatpush3.msra.mxu0 %v525_v33 }
 0x147   :  { %856 = vmatprep.subr.mxu0 %v954_v0 }
 0x148   :  { %857 = vmatpush3.msra.mxu0 %v524_v34 }
 0x149   :  { %858 = vmatprep.subr.mxu0 %v954_v0 }
 0x14a   :  { %859 = vmatpush3.msra.mxu0 %v523_v35 }
 0x14b   :  { %860 = vmatprep.subr.mxu0 %v954_v0 }
 0x14c   :  { %861 = vmatpush3.msra.mxu0 %v522_v36 }
 0x14d   :  { %862 = vmatprep.subr.mxu0 %v954_v0 }
 0x14e   :  { %863 = vmatpush3.msra.mxu0 %v521_v37 }
 0x14f   :  { %864 = vmatprep.subr.mxu0 %v954_v0 }
 0x150   :  { %865 = vmatpush3.msra.mxu0 %v520_v38 }
 0x151   :  { %866 = vmatprep.subr.mxu0 %v954_v0 }
 0x152   :  { %867 = vmatpush3.msra.mxu0 %v519_v39 }
 0x153   :  { %868 = vmatprep.subr.mxu0 %v954_v0 }
 0x154   :  { %869 = vmatpush3.msra.mxu0 %v518_v40 }
 0x155   :  { %870 = vmatprep.subr.mxu0 %v954_v0 }
 0x156   :  { %871 = vmatpush3.msra.mxu0 %v517_v41 }
 0x157   :  { %872 = vmatprep.subr.mxu0 %v954_v0 }
 0x158   :  { %873 = vmatpush3.msra.mxu0 %v516_v42 }
 0x159   :  { %874 = vmatprep.subr.mxu0 %v954_v0 }
 0x15a   :  { %875 = vmatpush3.msra.mxu0 %v515_v43 }
 0x15b   :  { %876 = vmatprep.subr.mxu0 %v954_v0 }
 0x15c   :  { %877 = vmatpush3.msra.mxu0 %v514_v44 }
 0x15d   :  { %878 = vmatprep.subr.mxu0 %v954_v0 }
 0x15e   :  { %879 = vmatpush3.msra.mxu0 %v513_v45 }
 0x1ff   :  { %v339_v54 = vpop.f32.mrf.mxu0 }
 0x200   :  { %v340_v55 = vadd.f32 %v339_v54, %v272_v50 }
 0x201   :  { %v812_v56 = vpop.f32.mrf.mxu0 }
 0x202   :  { %v343_v57 = vmul.f32 %v340_v55, %v340_v55  ;;  %v344_v58 = vrot.slane %v340_v55, 4 }
 0x204   :  { %v345_v59 = vadd.f32 %v344_v58, %v340_v55  ;;  %v350_v60 = vrot.slane %v343_v57, 4 }
 0x206   :  { %v346_v61 = vrot.slane %v345_v59, 2  ;;  %v351_v62 = vadd.f32 %v350_v60, %v343_v57 }
 0x208   :  { %v347_v63 = vadd.f32 %v346_v61, %v345_v59  ;;  %v352_v1 = vrot.slane %v351_v62, 2 }
 0x20a   :  { %v348_v2 = vrot.slane %v347_v63, 1  ;;  %v353_v3 = vadd.f32 %v352_v1, %v351_v62 }
 0x20c   :  { %v349_v4 = vadd.f32 %v348_v2, %v347_v63  ;;  %v354_v5 = vrot.slane %v353_v3, 1 }
 0x20e   :  { %v355_v6 = vadd.f32 %v354_v5, %v353_v3  ;;  %v356_v7 = vmul.f32 0.125, %v349_v4 }
 0x210   :  { %v357_v8 = vmul.f32 0.125, %v355_v6  ;;  %v358_v9 = vmul.f32 %v356_v7, %v356_v7  ;;  %v361_v16 = vsub.f32 %v340_v55, %v356_v7 }
 0x212   :  { %v359_v10 = vsub.f32 %v357_v8, %v358_v9  ;;  %v31_v8 = vld [vmem:[%s1119_s2 + $0x8] sm:$0xff]  ;;  %s956_s2 = smov [#allocation5]  }
 0x213   :  { %v498_v9 = vrot.slane %v31_v8, %v50_v28  ;;  %s611_s23 = sshll.u32 %s956_s2, 4  ;;  %s612_s23 = int_to_ptr.vmem [resolvable:$true] %s611_s23 }
 0x214   :  { %v360_v11 = vmax.f32 %v359_v10, 0.0  ;;  %s927_s24 = scalar_lea.vmem %s612_s23, 128  ;;  %p932_p6 = scmp.lt.s32.totalorder %s612_s23, %s612_s23 }
 0x215   :  { %p928_p5 = scmp.ne.s32.totalorder %s612_s23, %s927_s24  ;;  %p933_p7 = scmp.lt.s32.totalorder %s927_s24, %s927_s24 }
 0x216   :  { %v362_v12 = vadd.f32 1e-05, %v360_v11 }
 0x217   :  { %p934_p8 = por %p933_p7, %p932_p6 }
 0x218   :  { %895 = vrsqrt.f32 %v362_v12  ;;  %v503_v12 = vrot.slane %v31_v8, %v141_v52 }
 0x219   :  { %p935_p9 = pnand %p934_p8, %p928_p5 }
 0x225   :  { %v896_v18 = vpop.eup %895 }
 0x226   :  { %v364_v19 = vmul.f32 %v896_v18, %v361_v16 }
 0x228   :  { %v369_v21 = vmul.f32 %v368_v17, %v364_v19 }
 0x22a   :  { %v374_v22 = vadd.f32 %v373_v20, %v369_v21 }
 0x22c   :  { %v621_v23 = vmul.f32 -1.442695, %v374_v22 }
 0x22e   :  { %897 = vpow2.f32 %v621_v23 }
 0x23b   :  { %v898_v24 = vpop.eup %897 }
 0x23c   :  { %v378_v25 = vadd.f32 1.0, %v898_v24 }
 0x23e   :  { %899 = vrcp.f32 %v378_v25 }
 0x24b   :  { %v900_v26 = vpop.eup %899 }
 0x24c   :  { %v381_v27 = vmul.f32 %v900_v26, %v374_v22  ;;  %v532_v22 = vrot.slane %v31_v8, %v237_v14 }
 0x24e   :  { %846 = vmatmul.mubr.f32.vlgmr.msra.gmra.mxu1 %v381_v27 }
 0x30e   :  { %v469_v48 = vpop.f32.mrf.mxu1 }
 0x30f   :  { %v470_v49 = vadd.f32 %v469_v48, %v402_v47 }
 0x310   :  { %v847_v50 = vpop.f32.mrf.mxu1 }
 0x311   :  { %v473_v54 = vmul.f32 %v470_v49, %v470_v49  ;;  %v474_v55 = vrot.slane %v470_v49, 4 }
 0x313   :  { %v475_v56 = vadd.f32 %v474_v55, %v470_v49  ;;  %v480_v57 = vrot.slane %v473_v54, 4 }
 0x315   :  { %v476_v58 = vrot.slane %v475_v56, 2  ;;  %v481_v59 = vadd.f32 %v480_v57, %v473_v54 }
 0x317   :  { %v477_v60 = vadd.f32 %v476_v58, %v475_v56  ;;  %v482_v61 = vrot.slane %v481_v59, 2 }
 0x319   :  { %v478_v62 = vrot.slane %v477_v60, 1  ;;  %v483_v63 = vadd.f32 %v482_v61, %v481_v59 }
 0x31b   :  { %v479_v1 = vadd.f32 %v478_v62, %v477_v60  ;;  %v484_v0 = vrot.slane %v483_v63, 1 }
 0x31d   :  { %v485_v2 = vadd.f32 %v484_v0, %v483_v63  ;;  %v486_v3 = vmul.f32 0.125, %v479_v1 }
 0x31f   :  { %v487_v4 = vmul.f32 0.125, %v485_v2  ;;  %v488_v5 = vmul.f32 %v486_v3, %v486_v3  ;;  %v491_v10 = vsub.f32 %v470_v49, %v486_v3 }
 0x321   :  { %v489_v53 = vsub.f32 %v487_v4, %v488_v5 }
 0x323   :  { %v490_v6 = vmax.f32 %v489_v53, 0.0 }
 0x325   :  { %v492_v7 = vadd.f32 1e-05, %v490_v6 }
 0x327   :  { %901 = vrsqrt.f32 %v492_v7 }
 0x334   :  { %v902_v11 = vpop.eup %901 }
 0x335   :  { %v494_v13 = vmul.f32 %v902_v11, %v491_v10 }
 0x337   :  { %v499_v15 = vmul.f32 %v498_v9, %v494_v13 }
 0x339   :  { %v504_v16 = vadd.f32 %v503_v12, %v499_v15 }
 0x33b   :  { %v622_v17 = vmul.f32 -1.442695, %v504_v16 }
 0x33d   :  { %903 = vpow2.f32 %v622_v17 }
 0x34a   :  { %v904_v18 = vpop.eup %903 }
 0x34b   :  { %v508_v19 = vadd.f32 1.0, %v904_v18 }
 0x34d   :  { %905 = vrcp.f32 %v508_v19 }
 0x35a   :  { %v906_v20 = vpop.eup %905 }
 0x35b   :  { %v511_v21 = vmul.f32 %v906_v20, %v504_v16 }
 0x35d   :  { %881 = vmatmul.mubr.f32.vlgmr.msra.gmra.mxu0 %v511_v21 }
 0x41d   :  { %v599_v28 = vpop.f32.mrf.mxu0 }
 0x41e   :  { %v600_v23 = vadd.f32 %v599_v28, %v532_v22 }
 0x41f   :  { %v882_v24 = vpop.f32.mrf.mxu0 }
 0x420   :  { %v603_v52 = vadd.f32 %v600_v23, %v1064_v31 }
 0x422   :  { %604 = vst [vmem:[#allocation5] sm:$0xff] %v603_v52 }
 0x423   :  { %938 = shalt.err (!%p935_p9)
}
 0x424   :  { %614 = dma.vmem_to_hbm [thread:$0]  %s612_s23, 128, %s1120_s3, [#allocation4]  }
 0x425   :  { %949 = dma.done.wait [#allocation4], 128  }
 0x426   :  { %950 = vsyncadd [#allocation4], 4294967168 }
 0x427   :  { %618 = vsyncpa [#allocation3], 1 }
 0x428   :  { %619 = vsyncpa [#allocation4], 1 }

</bundles_post_ra>
